<compile_context>
chip_gen: v5e
topology: v5e:2x2
jax: 0.10.0
libtpu: 0.0.40
codegen_flags: <defaults>
</compile_context>

<pallas_src>
import jax
import jax.numpy as jnp
from jax.experimental import pallas as pl
from jax.experimental.pallas import tpu as pltpu

MIDDLE_RATIO = 2           # middle_layer_size_ratio
HIDDEN = 3 * MIDDLE_RATIO  # 6
_MXU_MIN_CHANNELS = 8      # below this, the fused 1x1 convs run on the VPU
_LANE = 128
_TARGET_TILE_BYTES = 1 << 20   # ~1 MiB f32 x-tile -> near HBM roofline


def _round_up(v, m):
    return ((v + m - 1) // m) * m


def _choose_tiling(C, P):
    """Return (TP, P_pad): TP multiple of 128, TP | P_pad, P_pad >= P."""
    p128 = _round_up(P, _LANE)
    target = max(_LANE,
                 ((_TARGET_TILE_BYTES // (max(C, 1) * 4)) // _LANE) * _LANE)
    if p128 <= target:
        return p128, p128
    # Prefer a tile that divides the 128-padded extent (no host pad copy).
    best = _LANE
    d = p128 // _LANE
    m = 1
    while m * m <= d:
        if d % m == 0:
            for f in (m, d // m):
                tp = f * _LANE
                if tp <= target and tp > best:
                    best = tp
        m += 1
    if best * 2 >= target:
        return best, p128
    # Divisor structure too coarse: pad the spatial axis up to the target.
    return target, _round_up(P, target)


def _pix_level_kernel(x_ref, wcat_ref, coef_ref, y_ref):
    C = x_ref.shape[1]
    x = x_ref[0]                          # (C, TP)
    xf = x.astype(jnp.float32)
    wcat = wcat_ref[...]                  # (2C, C) = [conv_avg ; conv_max]

    # ---- fused 1x1 convolutions -> (2C, TP) --------------------------------
    if C >= _MXU_MIN_CHANNELS:
        z = jnp.dot(wcat, xf, preferred_element_type=jnp.float32)
    else:
        # Tiny contraction: C unrolled broadcast FMAs on the VPU.
        z = wcat[:, 0:1] * xf[0:1, :]
        for k in range(1, C):
            z = z + wcat[:, k:k + 1] * xf[k:k + 1, :]
    z = jnp.maximum(z, 0.0)               # shared ReLU for both conv branches

    # ---- channel reductions -> (1, TP) --------------------------------------
    x_avg = jnp.mean(z[:C], axis=0, keepdims=True)
    x_max = jnp.max(z[C:], axis=0, keepdims=True)

    # ---- bottleneck MLP (3 -> 6 -> 1), vectorized over sublanes --------------
    # coef columns: [alpha, beta, b1, w2, b2]; x_out folded into alpha/beta.
    coef = coef_ref[...]                  # (6, 5)
    h = jnp.maximum(
        coef[:, 0:1] * x_avg + coef[:, 1:2] * x_max + coef[:, 2:3], 0.0
    )                                                              # (6, TP)
    gate = jnp.sum(coef[:, 3:4] * h, axis=0, keepdims=True) + coef[0:1, 4:5]

    # ---- gate the original input ---------------------------------------------
    y_ref[0] = (xf * gate).astype(y_ref.dtype)


@jax.jit
def pix_level_module(x, w_avg, w_max, W1, b1, W2, b2):
    """x: (N, C, H, W) float32 (NCHW, as in PyTorch). Returns (N, C, H, W)."""
    N, C, H, W = x.shape
    P = H * W

    TP, P_pad = _choose_tiling(C, P)

    x_flat = x.reshape(N, C, P)
    if P_pad != P:
        # Zero padding is harmless: padded lanes are sliced off below.
        x_flat = jnp.pad(x_flat, ((0, 0), (0, 0), (0, P_pad - P)))

    # Host-side parameter prep.
    w_cat = jnp.concatenate([w_avg, w_max], axis=0)           # (2C, C)
    alpha = (W1[:, 0] + W1[:, 2])[:, None]                    # coeff on x_avg
    beta = (W1[:, 1] + W1[:, 2])[:, None]                     # coeff on x_max
    b1c = b1[:, None]
    w2c = W2.reshape(HIDDEN, 1)
    b2c = jnp.full((HIDDEN, 1), b2[0], dtype=jnp.float32)
    coef = jnp.concatenate([alpha, beta, b1c, w2c, b2c], axis=1)  # (6, 5)

    const_map = lambda n, p: (0, 0)

    out = pl.pallas_call(
        _pix_level_kernel,
        out_shape=jax.ShapeDtypeStruct((N, C, P_pad), x.dtype),
        grid_spec=pltpu.PrefetchScalarGridSpec(
            num_scalar_prefetch=0,
            grid=(N, P_pad // TP),
            in_specs=[
                pl.BlockSpec((1, C, TP), lambda n, p: (n, 0, p)),  # x tile
                pl.BlockSpec((2 * C, C), const_map),               # fused conv W
                pl.BlockSpec((HIDDEN, 5), const_map),              # MLP coeffs
            ],
            out_specs=pl.BlockSpec((1, C, TP), lambda n, p: (n, 0, p)),
        ),
        compiler_params=pltpu.CompilerParams(
            dimension_semantics=("parallel", "parallel")),
    )(x_flat, w_cat, coef)

    if P_pad != P:
        out = out[:, :, :P]
    return out.reshape(N, C, H, W)


def ref_forward(x, w_avg, w_max, W1, b1, W2, b2):
    """Pure-JAX reference mirroring the PyTorch forward exactly."""
    xa = jnp.maximum(jnp.einsum('oc,nchw->nohw', w_avg, x), 0.0)
    xm = jnp.maximum(jnp.einsum('oc,nchw->nohw', w_max, x), 0.0)
    x_avg = jnp.mean(xa, axis=1, keepdims=True)
    x_max = jnp.max(xm, axis=1, keepdims=True)
    x_out = x_avg + x_max
    feats = jnp.concatenate([x_avg, x_max, x_out], axis=1)    # (N, 3, H, W)
    t = jnp.transpose(feats, (0, 3, 2, 1))                    # (N, W, H, 3)
    h = jnp.maximum(t @ W1.T + b1, 0.0)                       # (N, W, H, 6)
    o = h @ W2.T + b2                                         # (N, W, H, 1)
    o = jnp.transpose(o, (0, 3, 2, 1))                        # (N, 1, H, W)
    return o * x


if __name__ == "__main__":
    N, C, H, W = 2, 4, 16, 16

    key = jax.random.PRNGKey(0)
    k = jax.random.split(key, 8)

    x = jax.random.normal(k[0], (N, C, H, W), dtype=jnp.float32)

    # Parameters (deterministic; 1x1 conv weights stored as (Cout, Cin)).
    w_avg = jax.random.normal(k[1], (C, C), dtype=jnp.float32) * 0.3
    w_max = jax.random.normal(k[2], (C, C), dtype=jnp.float32) * 0.3
    W1 = jax.random.normal(k[3], (HIDDEN, 3), dtype=jnp.float32) * 0.5  # Linear(3 -> 6)
    b1 = jax.random.normal(k[4], (HIDDEN,), dtype=jnp.float32) * 0.1
    W2 = jax.random.normal(k[5], (1, HIDDEN), dtype=jnp.float32) * 0.5  # Linear(6 -> 1)
    b2 = jax.random.normal(k[6], (1,), dtype=jnp.float32) * 0.1

    y = pix_level_module(x, w_avg, w_max, W1, b1, W2, b2)
    y = jax.block_until_ready(y)

    y_ref = jax.block_until_ready(ref_forward(x, w_avg, w_max, W1, b1, W2, b2))

    assert y.shape == (N, C, H, W)
    assert jnp.allclose(y, y_ref, atol=1e-4, rtol=1e-4), (
        float(jnp.max(jnp.abs(y - y_ref))))

    print("KERNEL_OK")
</pallas_src>

<mosaic_0001>
module attributes {stable_mosaic.version = 11 : i64} {
  func.func @_pix_level_kernel(%arg0: i32, %arg1: i32, %arg2: memref<1x4x256xf32, #tpu.memory_space<vmem>>, %arg3: memref<8x4xf32, #tpu.memory_space<vmem>>, %arg4: memref<6x5xf32, #tpu.memory_space<vmem>>, %arg5: memref<1x4x256xf32, #tpu.memory_space<vmem>>) attributes {dimension_semantics = [#tpu.dimension_semantics<parallel>, #tpu.dimension_semantics<parallel>], iteration_bounds = array<i64: 2, 1>, scalar_prefetch = 0 : i64, scratch_operands = 0 : i64, tpu.core_type = #tpu.core_type<tc>, window_params = [{transform_indices = @transform_0, window_bounds = array<i64: 1, 4, 256>}, {pipeline_mode = #tpu.pipeline_mode<synchronous>, transform_indices = @transform_1, window_bounds = array<i64: 8, 4>}, {pipeline_mode = #tpu.pipeline_mode<synchronous>, transform_indices = @transform_2, window_bounds = array<i64: 6, 5>}, {transform_indices = @transform_3, window_bounds = array<i64: 1, 4, 256>}]} {
    %c0 = arith.constant 0 : index
    %c0_0 = arith.constant 0 : index
    %c0_1 = arith.constant 0 : index
    %0 = vector.load %arg2[%c0, %c0_0, %c0_1] : memref<1x4x256xf32, #tpu.memory_space<vmem>>, vector<1x4x256xf32>
    %1 = vector.shape_cast %0 : vector<1x4x256xf32> to vector<4x256xf32>
    %c0_2 = arith.constant 0 : index
    %c0_3 = arith.constant 0 : index
    %2 = vector.load %arg3[%c0_2, %c0_3] : memref<8x4xf32, #tpu.memory_space<vmem>>, vector<8x4xf32>
    %3 = vector.extract_strided_slice %2 {offsets = [0, 0], sizes = [8, 1], strides = [1, 1]} : vector<8x4xf32> to vector<8x1xf32>
    %4 = vector.extract_strided_slice %1 {offsets = [0, 0], sizes = [1, 256], strides = [1, 1]} : vector<4x256xf32> to vector<1x256xf32>
    %5 = vector.broadcast %3 : vector<8x1xf32> to vector<8x256xf32>
    %6 = vector.broadcast %4 : vector<1x256xf32> to vector<8x256xf32>
    %7 = arith.mulf %5, %6 : vector<8x256xf32>
    %8 = vector.extract_strided_slice %2 {offsets = [0, 1], sizes = [8, 1], strides = [1, 1]} : vector<8x4xf32> to vector<8x1xf32>
    %9 = vector.extract_strided_slice %1 {offsets = [1, 0], sizes = [1, 256], strides = [1, 1]} : vector<4x256xf32> to vector<1x256xf32>
    %10 = vector.broadcast %8 : vector<8x1xf32> to vector<8x256xf32>
    %11 = vector.broadcast %9 : vector<1x256xf32> to vector<8x256xf32>
    %12 = arith.mulf %10, %11 : vector<8x256xf32>
    %13 = arith.addf %7, %12 : vector<8x256xf32>
    %14 = vector.extract_strided_slice %2 {offsets = [0, 2], sizes = [8, 1], strides = [1, 1]} : vector<8x4xf32> to vector<8x1xf32>
    %15 = vector.extract_strided_slice %1 {offsets = [2, 0], sizes = [1, 256], strides = [1, 1]} : vector<4x256xf32> to vector<1x256xf32>
    %16 = vector.broadcast %14 : vector<8x1xf32> to vector<8x256xf32>
    %17 = vector.broadcast %15 : vector<1x256xf32> to vector<8x256xf32>
    %18 = arith.mulf %16, %17 : vector<8x256xf32>
    %19 = arith.addf %13, %18 : vector<8x256xf32>
    %20 = vector.extract_strided_slice %2 {offsets = [0, 3], sizes = [8, 1], strides = [1, 1]} : vector<8x4xf32> to vector<8x1xf32>
    %21 = vector.extract_strided_slice %1 {offsets = [3, 0], sizes = [1, 256], strides = [1, 1]} : vector<4x256xf32> to vector<1x256xf32>
    %22 = vector.broadcast %20 : vector<8x1xf32> to vector<8x256xf32>
    %23 = vector.broadcast %21 : vector<1x256xf32> to vector<8x256xf32>
    %24 = arith.mulf %22, %23 : vector<8x256xf32>
    %25 = arith.addf %19, %24 : vector<8x256xf32>
    %cst = arith.constant 0.000000e+00 : f32
    %26 = vector.broadcast %cst : f32 to vector<8x256xf32>
    %27 = arith.maximumf %25, %26 : vector<8x256xf32>
    %28 = vector.extract_strided_slice %27 {offsets = [0, 0], sizes = [4, 256], strides = [1, 1]} : vector<8x256xf32> to vector<4x256xf32>
    %cst_4 = arith.constant dense<0.000000e+00> : vector<256xf32>
    %29 = vector.multi_reduction <add>, %28, %cst_4 [0] : vector<4x256xf32> to vector<256xf32>
    %30 = vector.shape_cast %29 : vector<256xf32> to vector<1x256xf32>
    %cst_5 = arith.constant 4.000000e+00 : f32
    %31 = vector.broadcast %cst_5 : f32 to vector<1x256xf32>
    %32 = arith.divf %30, %31 : vector<1x256xf32>
    %33 = vector.extract_strided_slice %27 {offsets = [4, 0], sizes = [4, 256], strides = [1, 1]} : vector<8x256xf32> to vector<4x256xf32>
    %cst_6 = arith.constant dense<0xFF800000> : vector<256xf32>
    %34 = vector.multi_reduction <maximumf>, %33, %cst_6 [0] : vector<4x256xf32> to vector<256xf32>
    %35 = vector.shape_cast %34 : vector<256xf32> to vector<1x256xf32>
    %c0_7 = arith.constant 0 : index
    %c0_8 = arith.constant 0 : index
    %36 = vector.load %arg4[%c0_7, %c0_8] : memref<6x5xf32, #tpu.memory_space<vmem>>, vector<6x5xf32>
    %37 = vector.extract_strided_slice %36 {offsets = [0, 0], sizes = [6, 1], strides = [1, 1]} : vector<6x5xf32> to vector<6x1xf32>
    %38 = vector.broadcast %37 : vector<6x1xf32> to vector<6x256xf32>
    %39 = vector.broadcast %32 : vector<1x256xf32> to vector<6x256xf32>
    %40 = arith.mulf %38, %39 : vector<6x256xf32>
    %41 = vector.extract_strided_slice %36 {offsets = [0, 1], sizes = [6, 1], strides = [1, 1]} : vector<6x5xf32> to vector<6x1xf32>
    %42 = vector.broadcast %41 : vector<6x1xf32> to vector<6x256xf32>
    %43 = vector.broadcast %35 : vector<1x256xf32> to vector<6x256xf32>
    %44 = arith.mulf %42, %43 : vector<6x256xf32>
    %45 = arith.addf %40, %44 : vector<6x256xf32>
    %46 = vector.extract_strided_slice %36 {offsets = [0, 2], sizes = [6, 1], strides = [1, 1]} : vector<6x5xf32> to vector<6x1xf32>
    %47 = vector.broadcast %46 : vector<6x1xf32> to vector<6x256xf32>
    %48 = arith.addf %45, %47 : vector<6x256xf32>
    %cst_9 = arith.constant 0.000000e+00 : f32
    %49 = vector.broadcast %cst_9 : f32 to vector<6x256xf32>
    %50 = arith.maximumf %48, %49 : vector<6x256xf32>
    %51 = vector.extract_strided_slice %36 {offsets = [0, 3], sizes = [6, 1], strides = [1, 1]} : vector<6x5xf32> to vector<6x1xf32>
    %52 = vector.broadcast %51 : vector<6x1xf32> to vector<6x256xf32>
    %53 = arith.mulf %52, %50 : vector<6x256xf32>
    %cst_10 = arith.constant dense<0.000000e+00> : vector<256xf32>
    %54 = vector.multi_reduction <add>, %53, %cst_10 [0] : vector<6x256xf32> to vector<256xf32>
    %55 = vector.shape_cast %54 : vector<256xf32> to vector<1x256xf32>
    %56 = vector.extract_strided_slice %36 {offsets = [0, 4], sizes = [1, 1], strides = [1, 1]} : vector<6x5xf32> to vector<1x1xf32>
    %57 = vector.broadcast %56 : vector<1x1xf32> to vector<1x256xf32>
    %58 = arith.addf %55, %57 : vector<1x256xf32>
    %59 = vector.broadcast %58 : vector<1x256xf32> to vector<4x256xf32>
    %60 = arith.mulf %1, %59 : vector<4x256xf32>
    %c0_11 = arith.constant 0 : index
    %c0_12 = arith.constant 0 : index
    %c0_13 = arith.constant 0 : index
    %61 = vector.load %arg5[%c0_11, %c0_12, %c0_13] : memref<1x4x256xf32, #tpu.memory_space<vmem>>, vector<1x4x256xf32>
    %62 = vector.shape_cast %61 : vector<1x4x256xf32> to vector<4x256xf32>
    %63 = vector.shape_cast %60 : vector<4x256xf32> to vector<1x4x256xf32>
    tpu.vector_store %arg5[%c0_11, %c0_12, %c0_13], %63 {strides = array<i32>} : memref<1x4x256xf32, #tpu.memory_space<vmem>>, vector<1x4x256xf32>,
    return
  }
  func.func @transform_0(%arg0: i32, %arg1: i32) -> (i32, i32, i32) {
    %c0_i32 = arith.constant 0 : i32
    %c0_i32_0 = arith.constant 0 : i32
    return %arg0, %c0_i32, %arg1 : i32, i32, i32
  }
  func.func @transform_1(%arg0: i32, %arg1: i32) -> (i32, i32) {
    %c0_i32 = arith.constant 0 : i32
    %c0_i32_0 = arith.constant 0 : i32
    %c0_i32_1 = arith.constant 0 : i32
    return %c0_i32, %c0_i32_0 : i32, i32
  }
  func.func @transform_2(%arg0: i32, %arg1: i32) -> (i32, i32) {
    %c0_i32 = arith.constant 0 : i32
    %c0_i32_0 = arith.constant 0 : i32
    %c0_i32_1 = arith.constant 0 : i32
    return %c0_i32, %c0_i32_0 : i32, i32
  }
  func.func @transform_3(%arg0: i32, %arg1: i32) -> (i32, i32, i32) {
    %c0_i32 = arith.constant 0 : i32
    %c0_i32_0 = arith.constant 0 : i32
    return %arg0, %c0_i32, %arg1 : i32, i32, i32
  }
}

</mosaic_0001>

<bundles_post_ra>
// kernel: pix_level_module.1
= control target key start
LH: loop header
LB: loop body
LE: loop exit
PB: predicated region body
PF: predicated region fallthrough
CT: control target
= control target key end

     0   :  { %s560_s12 = smov 0   ;;  %s562_s13 = smov 0   ;;  %s624_s0 = inlined_call_operand.vmem [shape: f32[2,4,256], index: 0, kind: input, shape index: {}]   ;;  %s625_s1 = inlined_call_operand.vmem [shape: f32[8,4], index: 1, kind: input, shape index: {}]   ;;  %s626_s2 = inlined_call_operand.vmem [shape: f32[6,5], index: 2, kind: input, shape index: {}]   ;;  %s627_s3 = inlined_call_operand.vmem [shape: f32[2,4,256], index: 3, kind: output, shape index: {}]  }
   0x1   :  { %s564_s14 = smov 0  }
   0x2 LB: > { %s25_s15 = sadd.s32 1, %s528_s13  ;;  %p460_p0 = scmp.ge.s32.totalorder %s532_s14, 1  ;;  %s532_s14 = sphi %s564_s14, %s13_s14   ;;  %s528_s13 = sphi %s562_s13, %s629_s13   ;;  %s524_s12 = sphi %s560_s12, %s628_s12  }
   0x3   : > { %p27_p1 = scmp.ge.s32.totalorder %s25_s15, 2  ;;  %p158_p2 = scmp.lt.s32.totalorder %s532_s14, 3 }
   0x5   : > { %s631_s15 = smov (%p27_p1, %s25_s15), 0  ;;  %p159_p3 = pnand %p460_p0, %p158_p2 }
   0x6   : > { %p191_p4 = scmp.lt.s32.totalorder (!%p159_p3), %s524_s12, 1 }
   0x7   : > { %162 = sbr.rel (%p159_p3) target bundleno = 196 (0xc4), region = 32 }
   0xc   : > { %v211_v0 = vld [vmem:[%s625_s1] sm:$0xff]  ;;  %v534_v1 = vmov 0   ;;  %v535_v2 = vmov 2   ;;  %v536_v4 = vmov 1   ;;  %v537_v5 = vmov 3   ;;  %s633_s12 = smov (!%p191_p4, %s524_s12), 1 }
   0xd   : > { %499 = vset.pattern.permute.xlu0 %v534_v1  ;;  %501 = vset.pattern.permute.xlu1 %v535_v2  ;;  %v309_v3 = vld [vmem:[%s626_s2] sm:$0x3f]  ;;  %v538_v6 = vmov 4   ;;  %s467_s20 = sshll.u32 %s633_s12, 3  ;;  %v539_v18 = vmov 4.0   ;;  %vm270_vm0 = vcmask 1043456  }
   0xe   : > { %214 = vperm.xlu0 %499, %v211_v0   ;;  %241 = vperm.xlu1 %501, %v211_v0   ;;  %s198_s23 = scalar_lea.vmem %s624_s0, %s467_s20  ;;  %508 = vrcp.f32 %v539_v18  ;;  %vm294_vm1 = vcmask 1047556   ;;  %vm339_vm3 = vcmask 1045504   ;;  %s208_s26 = scalar_lea.vmem %s627_s3, %s467_s20 }
   0xf   : > { %503 = vset.pattern.permute.xlu2 %v534_v1  ;;  %v596_v7 = vld [vmem:[%s198_s23] sm:$0xff] }
  0x10   : > { %312 = vperm.xlu2 %503, %v309_v3   ;;  %v218_v10 = vperm.slane %v596_v7, 0  ;;  %v219_v11 = vperm.slane %v596_v7, 4  ;;  %v230_v12 = vperm.slane %v596_v7, 1  ;;  %v231_v13 = vperm.slane %v596_v7, 5 }
  0x11   : > { %v244_v14 = vperm.slane %v596_v7, 2  ;;  %v245_v15 = vperm.slane %v596_v7, 6  ;;  %v258_v16 = vperm.slane %v596_v7, 3  ;;  %v259_v17 = vperm.slane %v596_v7, 7 }
  0x12   : > { %v222_v19 = vperm.slane %v218_v10, 0  ;;  %v223_v20 = vperm.slane %v219_v11, 0  ;;  %v234_v21 = vperm.slane %v230_v12, 1  ;;  %v235_v22 = vperm.slane %v231_v13, 1 }
  0x13   : > { %v248_v23 = vperm.slane %v244_v14, 2  ;;  %v249_v24 = vperm.slane %v245_v15, 2  ;;  %v262_v25 = vperm.slane %v258_v16, 3  ;;  %v263_v26 = vperm.slane %v259_v17, 3 }
  0x14   : > { %v509_v33 = vpop.eup %508 }
  0x15   : > { %v286_v42 = vmul.f32 4.0, %v509_v33  ;;  %vm290_vm2 = vweird.f32 %v509_v33 }
  0x16   : > { %500 = vset.pattern.permute.xlu0 %v536_v4  ;;  %502 = vset.pattern.permute.xlu1 %v537_v5 }
  0x17   : > { %227 = vperm.xlu0 %500, %v211_v0   ;;  %255 = vperm.xlu1 %502, %v211_v0   ;;  %v287_v47 = vsub.f32 1.0, %v286_v42 }
  0x18   : > { %504 = vset.pattern.permute.xlu2 %v536_v4 }
  0x19   : > { %318 = vperm.xlu2 %504, %v309_v3   ;;  %v288_v56 = vmul.f32 %v509_v33, %v287_v47 }
  0x1f   : > { %505 = vset.pattern.permute.xlu1 %v535_v2  ;;  %507 = vset.pattern.permute.xlu0 %v538_v6  ;;  %v289_v2 = vadd.f32 %v509_v33, %v288_v56 }
  0x20   : > { %326 = vperm.xlu1 %505, %v309_v3   ;;  %355 = vperm.xlu0 %507, %v309_v3  }
  0x21   : > { %506 = vset.pattern.permute.xlu2 %v537_v5  ;;  %v291_v12 = vsel %vm290_vm2, %v509_v33, %v289_v2 }
  0x22   : > { %334 = vperm.xlu2 %506, %v309_v3  }
  0x6a   : > { %v313_v57 = vpop.permute.xlu2 %312 }
  0x73   : > { %v319_v17 = vpop.permute.xlu2 %318 }
  0x80   : > { %v215_v8 = vpop.permute.xlu0 %214  ;;  %v242_v9 = vpop.permute.xlu1 %241 }
  0x81   : > { %v224_v29 = vmul.f32 %v222_v19, %v215_v8  ;;  %v225_v30 = vmul.f32 %v223_v20, %v215_v8  ;;  %v250_v34 = vmul.f32 %v248_v23, %v242_v9  ;;  %v251_v35 = vmul.f32 %v249_v24, %v242_v9 }
  0x89   : > { %v228_v27 = vpop.permute.xlu0 %227  ;;  %v256_v28 = vpop.permute.xlu1 %255 }
  0x8a   : > { %v236_v31 = vmul.f32 %v234_v21, %v228_v27  ;;  %v237_v32 = vmul.f32 %v235_v22, %v228_v27  ;;  %v264_v38 = vmul.f32 %v262_v25, %v256_v28  ;;  %v265_v39 = vmul.f32 %v263_v26, %v256_v28 }
  0x8c   : > { %v238_v36 = vadd.f32 %v236_v31, %v224_v29  ;;  %v239_v37 = vadd.f32 %v237_v32, %v225_v30  ;;  %v335_v29 = vpop.permute.xlu2 %334 }
  0x8e   : > { %v252_v40 = vadd.f32 %v250_v34, %v238_v36  ;;  %v253_v41 = vadd.f32 %v251_v35, %v239_v37 }
  0x90   : > { %v266_v43 = vadd.f32 %v264_v38, %v252_v40  ;;  %v267_v44 = vadd.f32 %v265_v39, %v253_v41 }
  0x92   : > { %v268_v45 = vmax.f32 %v266_v43, 0.0  ;;  %v269_v46 = vmax.f32 %v267_v44, 0.0  ;;  %v327_v24 = vpop.permute.xlu1 %326 }
  0x94   : > { %v271_v48 = vsel %vm270_vm0, %v268_v45, 0.0  ;;  %v278_v49 = vsel %vm270_vm0, %v269_v46, 0.0  ;;  %v295_v50 = vsel %vm294_vm1, %v268_v45, -inf  ;;  %v302_v51 = vsel %vm294_vm1, %v269_v46, -inf  ;;  %v356_v46 = vpop.permute.xlu0 %355 }
  0x95   : > { %v272_v52 = vrot.slane %v271_v48, 4  ;;  %v279_v53 = vrot.slane %v278_v49, 4  ;;  %v296_v54 = vrot.slane %v295_v50, 4  ;;  %v303_v55 = vrot.slane %v302_v51, 4 }
  0x97   : > { %v273_v58 = vadd.f32 %v272_v52, %v271_v48  ;;  %v280_v59 = vadd.f32 %v279_v53, %v278_v49  ;;  %v297_v60 = vmax.f32 %v295_v50, %v296_v54  ;;  %v304_v61 = vmax.f32 %v302_v51, %v303_v55 }
  0x99   : > { %v274_v62 = vrot.slane %v273_v58, 2  ;;  %v281_v63 = vrot.slane %v280_v59, 2  ;;  %v298_v0 = vrot.slane %v297_v60, 2  ;;  %v305_v1 = vrot.slane %v304_v61, 2 }
  0x9b   : > { %v275_v3 = vadd.f32 %v274_v62, %v273_v58  ;;  %v282_v4 = vadd.f32 %v281_v63, %v280_v59  ;;  %v299_v5 = vmax.f32 %v297_v60, %v298_v0  ;;  %v306_v6 = vmax.f32 %v304_v61, %v305_v1 }
  0x9d   : > { %v276_v8 = vrot.slane %v275_v3, 1  ;;  %v283_v9 = vrot.slane %v282_v4, 1  ;;  %v300_v10 = vrot.slane %v299_v5, 1  ;;  %v307_v11 = vrot.slane %v306_v6, 1 }
  0x9f   : > { %v277_v13 = vadd.f32 %v276_v8, %v275_v3  ;;  %v284_v14 = vadd.f32 %v283_v9, %v282_v4  ;;  %v301_v15 = vmax.f32 %v299_v5, %v300_v10  ;;  %v308_v16 = vmax.f32 %v306_v6, %v307_v11 }
  0xa1   : > { %v292_v18 = vmul.f32 %v291_v12, %v277_v13  ;;  %v293_v19 = vmul.f32 %v291_v12, %v284_v14  ;;  %v321_v22 = vmul.f32 %v319_v17, %v301_v15  ;;  %v322_v23 = vmul.f32 %v319_v17, %v308_v16 }
  0xa3   : > { %v315_v20 = vmul.f32 %v313_v57, %v292_v18  ;;  %v316_v21 = vmul.f32 %v313_v57, %v293_v19 }
  0xa5   : > { %v323_v25 = vadd.f32 %v321_v22, %v315_v20  ;;  %v324_v26 = vadd.f32 %v322_v23, %v316_v21 }
  0xa7   : > { %v329_v27 = vadd.f32 %v327_v24, %v323_v25  ;;  %v330_v28 = vadd.f32 %v327_v24, %v324_v26 }
  0xa9   : > { %v331_v30 = vmax.f32 %v329_v27, 0.0  ;;  %v332_v31 = vmax.f32 %v330_v28, 0.0 }
  0xab   : > { %v337_v32 = vmul.f32 %v335_v29, %v331_v30  ;;  %v338_v33 = vmul.f32 %v335_v29, %v332_v31 }
  0xad   : > { %v340_v34 = vsel %vm339_vm3, %v337_v32, 0.0  ;;  %v347_v35 = vsel %vm339_vm3, %v338_v33, 0.0 }
  0xae   : > { %v341_v36 = vrot.slane %v340_v34, 4  ;;  %v348_v37 = vrot.slane %v347_v35, 4 }
  0xb0   : > { %v342_v38 = vadd.f32 %v341_v36, %v340_v34  ;;  %v349_v39 = vadd.f32 %v348_v37, %v347_v35 }
  0xb2   : > { %v343_v40 = vrot.slane %v342_v38, 2  ;;  %v350_v41 = vrot.slane %v349_v39, 2 }
  0xb4   : > { %v344_v42 = vadd.f32 %v343_v40, %v342_v38  ;;  %v351_v43 = vadd.f32 %v350_v41, %v349_v39 }
  0xb6   : > { %v345_v44 = vrot.slane %v344_v42, 1  ;;  %v352_v45 = vrot.slane %v351_v43, 1 }
  0xb8   : > { %v346_v47 = vadd.f32 %v345_v44, %v344_v42  ;;  %v353_v48 = vadd.f32 %v352_v45, %v351_v43 }
  0xba   : > { %v358_v49 = vadd.f32 %v356_v46, %v346_v47  ;;  %v359_v50 = vadd.f32 %v356_v46, %v353_v48 }
  0xbc   : > { %v361_v51 = vperm.slane %v359_v50, 0  ;;  %v360_v52 = vperm.slane %v358_v49, 0 }
  0xbe   : > { %v364_v53 = vrot.slane %v361_v51, 4 }
  0xc0   : > { %v365_v54 = vsel %vm270_vm0, %v360_v52, %v364_v53 }
  0xc1   : > { %v367_v55 = vmul.f32 %v365_v54, %v596_v7 }
  0xc3   : > { %368 = vst [vmem:[%s208_s26] sm:$0xff] %v367_v55 }
  0xc4 PF: > { %s13_s14 = sadd.s32 1, %s532_s14   ;;  %s628_s12 = smov %s528_s13 }
  0xc5   : > { %p10_p5 = scmp.ge.s32.totalorder %s13_s14, 4   ;;  %s629_s13 = smov %s631_s15 }
  0xc7   :  { %12 = sbr.rel (!%p10_p5) target bundleno = 2 (0x2), region = 62 }

</bundles_post_ra>
